<compile_context>
chip_gen: v5e
topology: v5e:2x2
jax: 0.10.0
libtpu: 0.0.40
codegen_flags: <defaults>
</compile_context>

<pallas_src>
from functools import partial

import jax
import jax.numpy as jnp
from jax import lax
from jax.experimental import pallas as pl
from jax.experimental.pallas import tpu as pltpu


def _dilated_residual_kernel(x_ref, wf_ref, b1_ref, wp_ref, b2_ref, o_ref,
                             *, dilation):
    # x_ref : (Nb, C_in, T)       un-padded input block (time on lanes)
    # wf_ref: (C_out, 3*C_in)     fused 3-tap dilated-conv weight
    # b1_ref: (C_out, 1)
    # wp_ref: (C_out, C_out)      1x1 conv weight
    # b2_ref: (C_out, 1)
    # o_ref : (Nb, C_out, T)
    nb, c_out, t = o_ref.shape
    c_in = x_ref.shape[1]
    d = dilation

    x = x_ref[...]                                    # (Nb, C_in, T)

    # Build the halo in-kernel: x_left[t] = x[t-d], x_right[t] = x[t+d],
    # zero outside the valid range (same as Conv1d padding=d).
    if d < t:
        z = jnp.zeros((nb, c_in, d), dtype=x.dtype)
        x_left = jnp.concatenate([z, x[:, :, :t - d]], axis=2)
        x_right = jnp.concatenate([x[:, :, d:], z], axis=2)
    else:                                             # all taps fall in padding
        x_left = jnp.zeros_like(x)
        x_right = jnp.zeros_like(x)

    # Stack the three taps along channels: [x[t-d]; x[t]; x[t+d]] -> (Nb, 3C, T).
    # Hoisted out of the per-row loop; channel concat is sublane-aligned.
    x_stack = jnp.concatenate([x_left, x, x_right], axis=1)

    wf = wf_ref[...]
    wp = wp_ref[...]
    # Hoist the bias lane-broadcasts out of the unrolled batch loop.
    b1 = jnp.broadcast_to(b1_ref[...], (c_out, t))
    b2 = jnp.broadcast_to(b2_ref[...], (c_out, t))

    for b in range(nb):                               # static unroll over rows
        # Fused dilated conv: a single MXU matmul with K = 3*C_in.
        h = jnp.dot(wf, x_stack[b].astype(wf.dtype),
                    preferred_element_type=jnp.float32) + b1
        h = jnp.maximum(h, 0.0)                       # ReLU
        # 1x1 conv over channels.
        out = jnp.dot(wp, h.astype(wp.dtype),
                      preferred_element_type=jnp.float32) + b2
        # Dropout is identity at inference; residual add in f32.
        o_ref[b] = (x[b].astype(jnp.float32) + out).astype(o_ref.dtype)


def _pick_batch_block(n, requested=None):
    """Batch rows per grid step: amortize per-step overhead, keep >=2 grid
    steps when possible (both v7x TensorCores busy), and divide N exactly."""
    if requested is not None:
        assert n % requested == 0, "batch_block must divide N"
        return requested
    target = max(1, min(8, n // 2))
    for nb in range(target, 0, -1):
        if n % nb == 0:
            return nb
    return 1


def dilated_residual_layer(x_nct, w_dil, b_dil, w_1x1, b_1x1, dilation,
                           *, batch_block=None, compute_dtype=None):
    """x_nct: (N, C, T), PyTorch Conv1d layout (kept end-to-end, no transposes)."""
    n, c_in, t = x_nct.shape
    c_out = w_dil.shape[0]
    assert c_in == c_out, "residual add requires in_channels == out_channels"
    d = int(dilation)

    # Fuse the three conv taps into one (C_out, 3*C_in) weight:
    #   h[:, t] = W0 @ x[t-d] + W1 @ x[t] + W2 @ x[t+d]
    wf = jnp.concatenate(
        [w_dil[:, :, 0], w_dil[:, :, 1], w_dil[:, :, 2]], axis=1)  # (C_out, 3*C_in)
    wp = w_1x1[:, :, 0]                                            # (C_out, C_out)
    b1 = b_dil.reshape(c_out, 1).astype(jnp.float32)
    b2 = b_1x1.reshape(c_out, 1).astype(jnp.float32)
    if compute_dtype is not None:            # e.g. jnp.bfloat16 on v6e / v7x
        wf = wf.astype(compute_dtype)
        wp = wp.astype(compute_dtype)

    nb = _pick_batch_block(n, batch_block)
    grid = (n // nb,)

    kernel = partial(_dilated_residual_kernel, dilation=d)

    return pl.pallas_call(
        kernel,
        out_shape=jax.ShapeDtypeStruct((n, c_out, t), x_nct.dtype),
        grid_spec=pltpu.PrefetchScalarGridSpec(
            num_scalar_prefetch=0,
            grid=grid,
            in_specs=[
                pl.BlockSpec((nb, c_in, t), lambda i: (i, 0, 0)),    # x
                pl.BlockSpec((c_out, 3 * c_in), lambda i: (0, 0)),   # fused taps
                pl.BlockSpec((c_out, 1), lambda i: (0, 0)),          # b1
                pl.BlockSpec((c_out, c_out), lambda i: (0, 0)),      # 1x1 weight
                pl.BlockSpec((c_out, 1), lambda i: (0, 0)),          # b2
            ],
            out_specs=pl.BlockSpec((nb, c_out, t), lambda i: (i, 0, 0)),
        ),
        compiler_params=pltpu.CompilerParams(
            dimension_semantics=("parallel",)),
    )(x_nct, wf, b1, wp, b2)


def _reference(x_nct, w_dil, b_dil, w_1x1, b_1x1, dilation):
    """Pure-JAX reference using lax.conv_general_dilated (NCT layout)."""
    d = int(dilation)
    dn = ("NCH", "OIH", "NCH")
    h = lax.conv_general_dilated(
        x_nct, w_dil, window_strides=(1,), padding=[(d, d)],
        rhs_dilation=(d,), dimension_numbers=dn) + b_dil[None, :, None]
    h = jnp.maximum(h, 0.0)
    out = lax.conv_general_dilated(
        h, w_1x1, window_strides=(1,), padding=[(0, 0)],
        dimension_numbers=dn) + b_1x1[None, :, None]
    return x_nct + out


if __name__ == "__main__":
    key = jax.random.PRNGKey(0)
    k_x, k_w1, k_b1, k_w2, k_b2 = jax.random.split(key, 5)

    N, C, T = 2, 16, 128      # batch, channels (in == out), time
    dilation = 2

    x = jax.random.normal(k_x, (N, C, T), dtype=jnp.float32)
    w_dil = jax.random.normal(k_w1, (C, C, 3), dtype=jnp.float32) * 0.1
    b_dil = jax.random.normal(k_b1, (C,), dtype=jnp.float32) * 0.1
    w_1x1 = jax.random.normal(k_w2, (C, C, 1), dtype=jnp.float32) * 0.1
    b_1x1 = jax.random.normal(k_b2, (C,), dtype=jnp.float32) * 0.1

    y = dilated_residual_layer(x, w_dil, b_dil, w_1x1, b_1x1, dilation)
    y = jax.block_until_ready(y)

    y_ref = _reference(x, w_dil, b_dil, w_1x1, b_1x1, dilation)
    assert y.shape == (N, C, T)
    assert jnp.allclose(y, y_ref, atol=1e-4, rtol=1e-4), "mismatch vs reference"

    print("KERNEL_OK")
</pallas_src>

<mosaic_0001>
module attributes {stable_mosaic.version = 11 : i64} {
  func.func @_dilated_residual_kernel(%arg0: i32, %arg1: memref<1x16x128xf32, #tpu.memory_space<vmem>>, %arg2: memref<16x48xf32, #tpu.memory_space<vmem>>, %arg3: memref<16x1xf32, #tpu.memory_space<vmem>>, %arg4: memref<16x16xf32, #tpu.memory_space<vmem>>, %arg5: memref<16x1xf32, #tpu.memory_space<vmem>>, %arg6: memref<1x16x128xf32, #tpu.memory_space<vmem>>) attributes {dimension_semantics = [#tpu.dimension_semantics<parallel>], iteration_bounds = array<i64: 2>, scalar_prefetch = 0 : i64, scratch_operands = 0 : i64, tpu.core_type = #tpu.core_type<tc>, window_params = [{transform_indices = @transform_0, window_bounds = array<i64: 1, 16, 128>}, {pipeline_mode = #tpu.pipeline_mode<synchronous>, transform_indices = @transform_1, window_bounds = array<i64: 16, 48>}, {pipeline_mode = #tpu.pipeline_mode<synchronous>, transform_indices = @transform_2, window_bounds = array<i64: 16, 1>}, {pipeline_mode = #tpu.pipeline_mode<synchronous>, transform_indices = @transform_3, window_bounds = array<i64: 16, 16>}, {pipeline_mode = #tpu.pipeline_mode<synchronous>, transform_indices = @transform_4, window_bounds = array<i64: 16, 1>}, {transform_indices = @transform_5, window_bounds = array<i64: 1, 16, 128>}]} {
    %c0 = arith.constant 0 : index
    %c0_0 = arith.constant 0 : index
    %c0_1 = arith.constant 0 : index
    %0 = vector.load %arg1[%c0, %c0_0, %c0_1] : memref<1x16x128xf32, #tpu.memory_space<vmem>>, vector<1x16x128xf32>
    %cst = arith.constant 0.000000e+00 : f32
    %1 = vector.broadcast %cst : f32 to vector<1x16x2xf32>
    %2 = vector.extract_strided_slice %0 {offsets = [0, 0, 0], sizes = [1, 16, 126], strides = [1, 1, 1]} : vector<1x16x128xf32> to vector<1x16x126xf32>
    %3 = tpu.concatenate %1, %2 in 2 : vector<1x16x2xf32>, vector<1x16x126xf32> -> vector<1x16x128xf32>
    %4 = vector.extract_strided_slice %0 {offsets = [0, 0, 2], sizes = [1, 16, 126], strides = [1, 1, 1]} : vector<1x16x128xf32> to vector<1x16x126xf32>
    %5 = tpu.concatenate %4, %1 in 2 : vector<1x16x126xf32>, vector<1x16x2xf32> -> vector<1x16x128xf32>
    %6 = tpu.concatenate %3, %0, %5 in 1 : vector<1x16x128xf32>, vector<1x16x128xf32>, vector<1x16x128xf32> -> vector<1x48x128xf32>
    %c0_2 = arith.constant 0 : index
    %c0_3 = arith.constant 0 : index
    %7 = vector.load %arg2[%c0_2, %c0_3] : memref<16x48xf32, #tpu.memory_space<vmem>>, vector<16x48xf32>
    %c0_4 = arith.constant 0 : index
    %c0_5 = arith.constant 0 : index
    %8 = vector.load %arg4[%c0_4, %c0_5] : memref<16x16xf32, #tpu.memory_space<vmem>>, vector<16x16xf32>
    %c0_6 = arith.constant 0 : index
    %c0_7 = arith.constant 0 : index
    %9 = vector.load %arg3[%c0_6, %c0_7] : memref<16x1xf32, #tpu.memory_space<vmem>>, vector<16x1xf32>
    %10 = vector.shape_cast %9 : vector<16x1xf32> to vector<16x1xf32>
    %11 = vector.broadcast %10 : vector<16x1xf32> to vector<16x128xf32>
    %c0_8 = arith.constant 0 : index
    %c0_9 = arith.constant 0 : index
    %12 = vector.load %arg5[%c0_8, %c0_9] : memref<16x1xf32, #tpu.memory_space<vmem>>, vector<16x1xf32>
    %13 = vector.shape_cast %12 : vector<16x1xf32> to vector<16x1xf32>
    %14 = vector.broadcast %13 : vector<16x1xf32> to vector<16x128xf32>
    %15 = vector.shape_cast %6 : vector<1x48x128xf32> to vector<48x128xf32>
    %cst_10 = arith.constant dense<0.000000e+00> : vector<16x128xf32>
    %16 = tpu.matmul %7, %15, %cst_10 {dimension_numbers = #tpu.dot_dimension_numbers<[1], [0], [0], [1], [0, 0, 1, 1], [], []>} : vector<16x48xf32>, vector<48x128xf32>, vector<16x128xf32> -> vector<16x128xf32>
    %17 = arith.addf %16, %11 : vector<16x128xf32>
    %cst_11 = arith.constant 0.000000e+00 : f32
    %18 = vector.broadcast %cst_11 : f32 to vector<16x128xf32>
    %19 = arith.maximumf %17, %18 : vector<16x128xf32>
    %cst_12 = arith.constant dense<0.000000e+00> : vector<16x128xf32>
    %20 = tpu.matmul %8, %19, %cst_12 {dimension_numbers = #tpu.dot_dimension_numbers<[1], [0], [0], [1], [0, 0, 1, 1], [], []>} : vector<16x16xf32>, vector<16x128xf32>, vector<16x128xf32> -> vector<16x128xf32>
    %21 = arith.addf %20, %14 : vector<16x128xf32>
    %22 = vector.shape_cast %0 : vector<1x16x128xf32> to vector<16x128xf32>
    %23 = arith.addf %22, %21 : vector<16x128xf32>
    %c0_13 = arith.constant 0 : index
    %c0_14 = arith.constant 0 : index
    %c0_15 = arith.constant 0 : index
    %24 = vector.load %arg6[%c0_13, %c0_14, %c0_15] : memref<1x16x128xf32, #tpu.memory_space<vmem>>, vector<1x16x128xf32>
    %25 = vector.shape_cast %24 : vector<1x16x128xf32> to vector<16x128xf32>
    %26 = vector.shape_cast %23 : vector<16x128xf32> to vector<1x16x128xf32>
    tpu.vector_store %arg6[%c0_13, %c0_14, %c0_15], %26 {strides = array<i32>} : memref<1x16x128xf32, #tpu.memory_space<vmem>>, vector<1x16x128xf32>,
    return
  }
  func.func @transform_0(%arg0: i32) -> (i32, i32, i32) {
    %c0_i32 = arith.constant 0 : i32
    %c0_i32_0 = arith.constant 0 : i32
    %c0_i32_1 = arith.constant 0 : i32
    return %arg0, %c0_i32, %c0_i32_0 : i32, i32, i32
  }
  func.func @transform_1(%arg0: i32) -> (i32, i32) {
    %c0_i32 = arith.constant 0 : i32
    %c0_i32_0 = arith.constant 0 : i32
    %c0_i32_1 = arith.constant 0 : i32
    return %c0_i32, %c0_i32_0 : i32, i32
  }
  func.func @transform_2(%arg0: i32) -> (i32, i32) {
    %c0_i32 = arith.constant 0 : i32
    %c0_i32_0 = arith.constant 0 : i32
    %c0_i32_1 = arith.constant 0 : i32
    return %c0_i32, %c0_i32_0 : i32, i32
  }
  func.func @transform_3(%arg0: i32) -> (i32, i32) {
    %c0_i32 = arith.constant 0 : i32
    %c0_i32_0 = arith.constant 0 : i32
    %c0_i32_1 = arith.constant 0 : i32
    return %c0_i32, %c0_i32_0 : i32, i32
  }
  func.func @transform_4(%arg0: i32) -> (i32, i32) {
    %c0_i32 = arith.constant 0 : i32
    %c0_i32_0 = arith.constant 0 : i32
    %c0_i32_1 = arith.constant 0 : i32
    return %c0_i32, %c0_i32_0 : i32, i32
  }
  func.func @transform_5(%arg0: i32) -> (i32, i32, i32) {
    %c0_i32 = arith.constant 0 : i32
    %c0_i32_0 = arith.constant 0 : i32
    %c0_i32_1 = arith.constant 0 : i32
    return %arg0, %c0_i32, %c0_i32_0 : i32, i32, i32
  }
}

</mosaic_0001>

<bundles_post_ra>
// kernel: tpu_custom_call.1
= control target key start
LH: loop header
LB: loop body
LE: loop exit
PB: predicated region body
PF: predicated region fallthrough
CT: control target
= control target key end

     0   :  { %10 = vsyncpa [#allocation3], 0  ;;  %s877_s0 = inlined_call_operand.vmem [shape: f32[2,16,128], index: 0, kind: input, shape index: {}]   ;;  %s878_s1 = inlined_call_operand.hbm [shape: f32[16,48], index: 1, kind: input, shape index: {}]   ;;  %s879_s2 = inlined_call_operand.vmem [shape: f32[16,1], index: 2, kind: input, shape index: {}]   ;;  %s880_s3 = inlined_call_operand.hbm [shape: f32[16,16], index: 3, kind: input, shape index: {}]   ;;  %s881_s4 = inlined_call_operand.vmem [shape: f32[16,1], index: 4, kind: input, shape index: {}]   ;;  %s882_s5 = inlined_call_operand.hbm [shape: f32[2,16,128], index: 5, kind: output, shape index: {}]  }
   0x1   :  { %11 = vsyncpa [#allocation6], 0 }
   0x2   :  { %12 = vsyncpa [#allocation4], 0 }
   0x3   :  { %14 = vsyncpa [#allocation4 + $0x1], 0  ;;  %s748_s18 = smov 0   ;;  %s750_s19 = smov 0  }
   0x4   :  { %s752_s20 = smov 0   ;;  %s754_s21 = smov 0  }
   0x5 LB: > { %s769_s22 = sadd.s32 4294967295, %s707_s21   ;;  %s473_s23 = sadd.s32 4294967294, %s707_s21   ;;  %s707_s21 = sphi %s754_s21, %s889_s21   ;;  %s703_s20 = sphi %s752_s20, %s888_s20   ;;  %s699_s19 = sphi %s750_s19, %s887_s19   ;;  %s695_s18 = sphi %s748_s18, %s886_s18  }
   0x6   : > { %s773_s24 = sadd.s32 1, %s707_s21   ;;  %s137_s25 = sadd.s32 1, %s703_s20 }
   0x7   : > { %s134_s26 = ssub.s32 %s707_s21, %s773_s24  ;;  %p147_p0 = scmp.ne.s32.totalorder %s703_s20, %s699_s19 }
   0x8   : > { %p135_p1 = scmp.eq.s32.totalorder %s134_s26, 0  ;;  %p148_p2 = scmp.eq.s32.totalorder %s769_s22, 1 }
   0x9   : > { %p153_p3 = scmp.ne.s32.totalorder %s699_s19, %s695_s18  ;;  %p154_p4 = scmp.eq.s32.totalorder %s473_s23, 1 }
   0xa   : > { %s784_s27 = scalar_select %p135_p1, %s703_s20, %s137_s25  }
   0xb   : > { %p786_p5 = por %p148_p2, %p147_p0  ;;  %p790_p6 = por %p154_p4, %p153_p3 }
   0xc   : > { %p474_p7 = scmp.ge.s32.totalorder %s707_s21, 1  ;;  %p161_p8 = scmp.lt.s32.totalorder %s707_s21, 3 }
   0xd   : > { %p528_p9 = scmp.eq.s32.totalorder %s769_s22, 0  ;;  %s172_s8 = sshll.u32 %s878_s1, 4  ;;  %s173_s8 = int_to_ptr.hbm [resolvable:$true] %s172_s8 }
   0xe   : > { %p797_p10 = pnand %p474_p7, %p161_p8  ;;  %s709_s9 = smov [#allocation2]  }
   0xf   : > { %s174_s10 = sshll.u32 %s709_s9, 4  ;;  %s189_s13 = sshll.u32 %s880_s3, 4  ;;  %s175_s10 = int_to_ptr.vmem [resolvable:$true] %s174_s10  ;;  %s190_s13 = int_to_ptr.hbm [resolvable:$true] %s189_s13 }
  0x10   : > { %p517_p11 = pneg %p797_p10  ;;  %s710_s14 = smov 128  }
  0x11   : > { %s711_s15 = smov 8   ;;  %s712_s16 = smov [#allocation5]  }
  0x12   : > { %p518_p12 = pnand %p528_p9, %p517_p11  ;;  %s191_s17 = sshll.u32 %s712_s16, 4  ;;  %s192_s17 = int_to_ptr.vmem [resolvable:$true] %s191_s17 }
  0x13   : > { %218 = sbr.rel (%p797_p10) target bundleno = 447 (0x1bf), region = 40 }
  0x14   : > { %520 = dma.hbm_to_vmem [thread:$0]  (!%p518_p12), %s173_s8, 256, %s175_s10, [#allocation3], %s710_s14, %s710_s14, %s711_s15  }
  0x15   : > { %523 = dma.hbm_to_vmem [thread:$0]  (!%p518_p12), %s190_s13, 256, %s192_s17, [#allocation6], %s710_s14, %s710_s14, %s711_s15  }
  0x18   : > { %682 = dma.done.wait (%p528_p9), [#allocation3], 256  }
  0x19   : > { %684 = vsyncadd (%p528_p9), [#allocation3], 4294967040 }
  0x1a   : > { %686 = dma.done.wait (%p528_p9), [#allocation6], 256  }
  0x1b   : > { %688 = vsyncadd (%p528_p9), [#allocation6], 4294967040  ;;  %p252_p13 = scmp.lt.s32.totalorder %s769_s22, 1  ;;  %s713_s7 = smov 126   ;;  %v284_v2 = vld [vmem:[%s879_s2 + $0x8] sm:$0xff]  ;;  %v715_v3 = vmov 0  }
  0x1c   : > { %s714_s8 = smov 2   ;;  %574 = vset.pattern.permute.xlu2 %v715_v3  ;;  %575 = vset.pattern.permute.xlu0 %v715_v3  ;;  %v283_v4 = vld [vmem:[%s879_s2] sm:$0xff]  ;;  %vm276_vm0 = vcmask 1031168   ;;  %vm267_vm1 = vcmask 15360   ;;  %vm307_vm3 = vcmask 392192   ;;  %v280_v10 = vld [vmem:[#allocation2 + $0x8] sm:$0xff] }
  0x1d   : > { %s253_s23 = scalar_select %p252_p13, %s769_s22, 1  ;;  %292 = vperm.xlu2 %574, %v284_v2   ;;  %576 = vset.pattern.permute.xlu1 %v715_v3  ;;  %vm486_vm2 = vmneg %vm267_vm1  ;;  %v279_v9 = vld [vmem:[#allocation2] sm:$0xff]  ;;  %v296_v12 = vld [vmem:[%s881_s4 + $0x8] sm:$0xff]  ;;  %vm339_vm4 = vcmask 130048  }
  0x1e   : > { %v295_v11 = vld [vmem:[%s881_s4] sm:$0xff]  ;;  %v281_v21 = vld [vmem:[#allocation5] sm:$0xff]  ;;  %v282_v22 = vld [vmem:[#allocation5 + $0x8] sm:$0xff]  ;;  %s249_s17 = sand.u32 1, %s699_s19   ;;  %s657_s14 = scalar_lea.hbm %s882_s5, 32 }
  0x1f   : > { %s499_s25 = sshll.u32 %s253_s23, 4  ;;  %s481_s23 = sshll.u32 %s249_s17, 4 }
  0x20   : > { %s256_s6 = scalar_lea.vmem %s877_s0, %s499_s25  ;;  %s500_s25 = sshll.u32 %s769_s22, 4 }
  0x21   : > { %v826_v0 = vld [vmem:[%s256_s6 + $0x8] sm:$0xff]  ;;  %v257_v1 = vld [vmem:[%s256_s6] sm:$0xff]  ;;  %s385_s6 = scalar_lea.hbm %s882_s5, %s500_s25  ;;  %s374_s10 = scalar_lea.sflag [#allocation4], %s249_s17 }
  0x22   : > { %272 = vrot.lane.b32.xlu0 %v826_v0, %s713_s7  ;;  %263 = vrot.lane.b32.xlu1 %v826_v0, %s714_s8  ;;  %s388_s9 = sshll.u32 %s385_s6, 4  ;;  %s389_s9 = int_to_ptr.hbm [resolvable:$true] %s388_s9 }
  0x23   : > { %s651_s22 = sshra.s32 %s389_s9, 4  ;;  %s652_s22 = int_to_ptr.hbm [resolvable:$true] %s651_s22 }
  0x24   : > { %s653_s11 = scalar_lea.hbm %s652_s22, 16  ;;  %p658_p3 = scmp.lt.s32.totalorder %s652_s22, %s882_s5 }
  0x25   : > { %287 = vperm.xlu2 %574, %v283_v4   ;;  %p654_p0 = scmp.ne.s32.totalorder %s652_s22, %s653_s11  ;;  %p659_p4 = scmp.lt.s32.totalorder %s657_s14, %s653_s11 }
  0x27   : > { %p655_p1 = pnand %p654_p0, %p786_p5  ;;  %p660_p7 = por %p659_p4, %p658_p3 }
  0x29   : > { %p656_p2 = pneg %p655_p1 }
  0x2a   : > { %270 = vrot.lane.b32.xlu0 %v257_v1, %s713_s7  ;;  %261 = vrot.lane.b32.xlu1 %v257_v1, %s714_s8  ;;  %s251_s7 = scalar_lea.vmem [#allocation7], %s481_s23 }
  0x2b   : > { %s386_s8 = sshll.u32 %s251_s7, 4  ;;  %p661_p8 = pnand %p660_p7, %p656_p2  ;;  %s387_s8 = int_to_ptr.vmem [resolvable:$true] %s386_s8 }
  0x32   : > { %299 = vperm.xlu0 %575, %v295_v11   ;;  %304 = vperm.xlu1 %576, %v296_v12  }
  0x77   : > { %v293_v13 = vpop.permute.xlu2 %292 }
  0x7f   : > { %v288_v14 = vpop.permute.xlu2 %287 }
  0x94   : > { %v273_v5 = vpop.permute.xlu0 %272  ;;  %v264_v6 = vpop.permute.xlu1 %263 }
  0x95   : > { %484 = vmatpush.msk.msra.mxu0 %vm276_vm0, %v273_v5  ;;  %501 = vmatpush.msk.msra.mxu2 %vm276_vm0, %v273_v5 }
  0x9c   : > { %v271_v7 = vpop.permute.xlu0 %270  ;;  %v262_v8 = vpop.permute.xlu1 %261 }
  0x9d   : > { %485 = vmatpush.msk.msra.mxu0 %vm276_vm0, %v271_v7  ;;  %502 = vmatpush.msk.msra.mxu2 %vm276_vm0, %v271_v7 }
  0x9f   : > { %326 = vmatpush.msra.mxu0 %v826_v0  ;;  %503 = vmatpush.msra.mxu2 %v826_v0 }
  0xa1   : > { %327 = vmatpush.msra.mxu0 %v257_v1  ;;  %504 = vmatpush.msra.mxu2 %v257_v1 }
  0xa3   : > { %487 = vmatpush.msk.msra.mxu0 %vm486_vm2, %v264_v6  ;;  %505 = vmatpush.msk.msra.mxu2 %vm486_vm2, %v264_v6 }
  0xa4   : > { %v300_v23 = vpop.permute.xlu0 %299  ;;  %v305_v27 = vpop.permute.xlu1 %304 }
  0xa5   : > { %489 = vmatpush.msk.msra.mxu0 %vm486_vm2, %v262_v8  ;;  %506 = vmatpush.msk.msra.mxu2 %vm486_vm2, %v262_v8 }
  0xa6   : > { %490 = vmatmul.msk.f32.vlgmr.msra.gmra.mxu0 %vm307_vm3, %v279_v9  ;;  %491 = vmatmul.msk.f32.vlgmr.msra.gmra.mxu2 %vm307_vm3, %v280_v10 }
 0x123   : > { %v331_v15 = vpop.f32.mrf.mxu0 }
 0x124   : > { %v332_v17 = vadd.f32 %v331_v15, %v288_v14 }
 0x126   : > { %v337_v20 = vmax.f32 %v332_v17, 0.0 }
 0x129   : > { %v334_v16 = vpop.f32.mrf.mxu2 }
 0x12a   : > { %v335_v18 = vadd.f32 %v334_v16, %v293_v13 }
 0x12c   : > { %v338_v19 = vmax.f32 %v335_v18, 0.0 }
 0x12e   : > { %360 = vmatpush.msra.mxu1 %v338_v19 }
 0x130   : > { %361 = vmatpush.msra.mxu1 %v337_v20 }
 0x131   : > { %492 = vmatmul.msk.f32.vlgmr.msra.gmra.mxu1 %vm339_vm4, %v281_v21 }
 0x139   : > { %493 = vmatmul.msk.f32.gmra.mxu1 %vm339_vm4, %v282_v22 }
 0x1ae   : > { %v363_v24 = vpop.f32.mrf.mxu1 }
 0x1af   : > { %v364_v25 = vadd.f32 %v363_v24, %v300_v23 }
 0x1b1   : > { %v369_v26 = vadd.f32 %v364_v25, %v257_v1 }
 0x1b3   : > { %371 = vst [vmem:[%s251_s7] sm:$0xff] %v369_v26 }
 0x1b6   : > { %v366_v28 = vpop.f32.mrf.mxu1 }
 0x1b7   : > { %v367_v29 = vadd.f32 %v366_v28, %v305_v27 }
 0x1b9   : > { %v370_v30 = vadd.f32 %v367_v29, %v826_v0 }
 0x1bb   : > { %372 = vst [vmem:[%s251_s7 + $0x8] sm:$0xff] %v370_v30 }
 0x1bc   : > { %664 = shalt.err (!%p661_p8)
}
 0x1bd   : > { %s716_s17 = smov 128   ;;  %s717_s23 = smov 8  }
 0x1be   : > { %515 = dma.vmem_to_hbm [thread:$0]  (%p786_p5), %s387_s8, 256, %s389_s9, %s374_s10, %s716_s17, %s716_s17, %s717_s23  }
 0x1bf PF: > { %p532_p9 = scmp.ge.s32.totalorder %s707_s21, 2  ;;  %s403_s25 = sand.u32 1, %s695_s18  }
 0x1c0   : > { %s404_s26 = scalar_lea.sflag [#allocation4], %s403_s25 }
 0x1c1   : > { %p525_p10 = pnand %p532_p9, %p790_p6 }
 0x1c3   : > { %p526_p11 = pneg %p525_p10 }
 0x1c5   : > { %690 = dma.done.wait (%p526_p11), %s404_s26, 256  }
 0x1c6   : > { %692 = vsyncadd (%p526_p11), %s404_s26, 4294967040  ;;  %p17_p12 = scmp.ge.s32.totalorder %s773_s24, 4   ;;  %s886_s18 = smov %s699_s19 }
 0x1c7   : > { %s887_s19 = smov %s703_s20  ;;  %s888_s20 = smov %s784_s27 }
 0x1c8   : > { %s889_s21 = smov %s773_s24  ;;  %19 = sbr.rel (!%p17_p12) target bundleno = 5 (0x5), region = 84 }
 0x1cd   :  { %410 = vsyncpa [#allocation3], 1 }
 0x1ce   :  { %412 = vsyncpa [#allocation3 + $0x1], 1 }
 0x1cf   :  { %413 = vsyncpa [#allocation6], 1 }
 0x1d0   :  { %414 = vsyncpa [#allocation4], 1 }
 0x1d1   :  { %416 = vsyncpa [#allocation4 + $0x1], 1 }

</bundles_post_ra>
